<compile_context>
chip_gen: v5e
topology: v5e:2x2
jax: 0.10.0
libtpu: 0.0.40
codegen_flags: <defaults>
</compile_context>

<pallas_src>
import functools

import jax
import jax.numpy as jnp
from jax.experimental import pallas as pl
from jax.experimental.pallas import tpu as pltpu

_MIB = 1024 * 1024


def _round_up(a, b):
    return (a + b - 1) // b * b


def _cdiv(a, b):
    return (a + b - 1) // b


def _sublane_pack(dtype):
    itemsize = jnp.dtype(dtype).itemsize
    if itemsize >= 4:
        return 8
    if itemsize == 2:
        return 16
    return 32


def _vmem_limit_bytes(footprint_bytes):
    """Scoped-VMEM budget: at least 32 MiB, at most half of physical VMEM."""
    cap = 64 * _MIB  # conservative default (v7x physical VMEM per TC)
    try:
        info = pltpu.get_tpu_info()
        cap = int(getattr(info, "vmem_capacity_bytes", cap))
    except Exception:
        pass
    budget = max(32 * _MIB, int(1.25 * footprint_bytes))
    return int(min(budget, cap // 2))


# ----------------------------------------------------------------------------
# Kernels.  Grid = (M tiles, N tiles, K tiles); K is the innermost axis.
# ----------------------------------------------------------------------------
def _slimfc_kernel_f32(x_ref, w_ref, b_ref, o_ref, *, activation):
    # f32 output: accumulate directly into the resident output block.
    k = pl.program_id(2)

    @pl.when(k == 0)
    def _init():
        o_ref[...] = jnp.zeros_like(o_ref)

    # x_ref: (tm, tk); w_ref: (tk, tn) block of the pre-transposed weight.
    o_ref[...] += jnp.dot(x_ref[...], w_ref[...],
                          preferred_element_type=jnp.float32)

    @pl.when(k == pl.num_programs(2) - 1)
    def _epilogue():
        y = o_ref[...] + b_ref[...]          # (tm,tn) + (1,tn), both f32
        if activation == "relu":
            y = jnp.maximum(y, 0.0)
        elif activation == "tanh":
            y = jnp.tanh(y)
        o_ref[...] = y


def _slimfc_kernel_acc(x_ref, w_ref, b_ref, o_ref, acc_ref, *, activation):
    # Sub-f32 output: f32 VMEM accumulator, single cast + store in epilogue.
    k = pl.program_id(2)

    @pl.when(k == 0)
    def _init():
        acc_ref[...] = jnp.zeros_like(acc_ref)

    acc_ref[...] += jnp.dot(x_ref[...], w_ref[...],
                            preferred_element_type=jnp.float32)

    @pl.when(k == pl.num_programs(2) - 1)
    def _epilogue():
        y = acc_ref[...] + b_ref[...]
        if activation == "relu":
            y = jnp.maximum(y, 0.0)
        elif activation == "tanh":
            y = jnp.tanh(y)
        o_ref[...] = y.astype(o_ref.dtype)


# ----------------------------------------------------------------------------
# SlimFC module: does the one-time weight transpose / pad / cast at __init__.
# ----------------------------------------------------------------------------
class SlimFC:
    """y = activation(x @ W.T + b), W given in nn.Linear (out, in) layout."""

    def __init__(self, weight, bias, activation=None, *, param_dtype=None,
                 batch_hint=None, tn=None, tk=None):
        out_size, in_size = weight.shape
        assert bias.shape == (out_size,)
        self.in_size = in_size
        self.out_size = out_size
        self.activation = activation
        self.param_dtype = jnp.dtype(param_dtype or jnp.asarray(weight).dtype)
        self._pack = _sublane_pack(self.param_dtype)

        big_batch = batch_hint is not None and batch_hint >= 512
        self._tm_cap = 512 if big_batch else 256
        tn_cap = 1024 if big_batch else 512
        tk_cap = 2048 if self.param_dtype.itemsize <= 2 else 1024

        if tn is None:
            tn = min(_round_up(out_size, 128), tn_cap)
            # v7x has 2 TensorCores: if the batch cannot give >=2 M tiles,
            # make sure there are >=2 N tiles so both cores get work.
            m_tiles_hint = _cdiv(
                _round_up(max(batch_hint or 1, 1), self._pack), self._tm_cap)
            np128 = _round_up(out_size, 128)
            if m_tiles_hint < 2 and np128 >= 256 and _round_up(out_size, tn) // tn < 2:
                tn = _round_up(_cdiv(np128, 2), 128)
        if tk is None:
            tk = min(_round_up(in_size, 128), tk_cap)
        self.tn, self.tk = tn, tk

        self.Kp = _round_up(in_size, tk)
        self.Np = _round_up(out_size, tn)

        # One-time parameter prep (NOT in the per-call hot path):
        #   transpose (out,in)->(in,out), zero-pad to (Kp,Np), cast.
        w_t = jnp.asarray(weight).T
        if (self.Kp, self.Np) != (in_size, out_size):
            w_t = jnp.pad(w_t, ((0, self.Kp - in_size), (0, self.Np - out_size)))
        self.w_t = w_t.astype(self.param_dtype)

        b = jnp.asarray(bias, jnp.float32)
        if self.Np != out_size:
            b = jnp.pad(b, (0, self.Np - out_size))
        self.bias = b.reshape(1, self.Np)   # bias kept in f32 for the epilogue

    def __call__(self, x):
        B, in_size = x.shape
        assert in_size == self.in_size
        x = x.astype(self.param_dtype)
        out_dtype = x.dtype

        tn, tk, Kp, Np = self.tn, self.tk, self.Kp, self.Np
        tm = min(_round_up(B, self._pack), self._tm_cap)
        Mp = _round_up(B, tm)

        # Only x may need per-call padding (batch rows / K cols).
        if (Mp, Kp) != (B, in_size):
            x = jnp.pad(x, ((0, Mp - B), (0, Kp - in_size)))

        grid = (Mp // tm, Np // tn, Kp // tk)

        x_bytes = jnp.dtype(x.dtype).itemsize
        w_bytes = jnp.dtype(self.w_t.dtype).itemsize
        o_bytes = jnp.dtype(out_dtype).itemsize

        use_scratch = out_dtype != jnp.float32
        if use_scratch:
            kernel = functools.partial(_slimfc_kernel_acc, activation=self.activation)
            scratch = [pltpu.VMEM((tm, tn), jnp.float32)]
        else:
            kernel = functools.partial(_slimfc_kernel_f32, activation=self.activation)
            scratch = []

        # Double-buffered input tiles + resident output (+ optional acc scratch).
        footprint = (2 * (tm * tk * x_bytes + tk * tn * w_bytes + tn * 4)
                     + 2 * tm * tn * o_bytes
                     + (tm * tn * 4 if use_scratch else 0))

        cost = pl.CostEstimate(
            flops=2 * Mp * Np * Kp,
            transcendentals=(Mp * Np if self.activation == "tanh" else 0),
            bytes_accessed=(
                Mp * Kp * x_bytes * (Np // tn)       # x re-streamed per N tile
                + Kp * Np * w_bytes * (Mp // tm)     # W re-streamed per M tile
                + Np * 4                             # bias
                + Mp * Np * o_bytes                  # output
            ),
        )

        out_padded = pl.pallas_call(
            kernel,
            out_shape=jax.ShapeDtypeStruct((Mp, Np), out_dtype),
            grid_spec=pltpu.PrefetchScalarGridSpec(
                num_scalar_prefetch=0,
                grid=grid,
                in_specs=[
                    # x tile (tm, tk)
                    pl.BlockSpec((tm, tk), lambda i, j, k: (i, k)),
                    # pre-transposed weight tile (tk, tn) -> native MXU shape
                    pl.BlockSpec((tk, tn), lambda i, j, k: (k, j)),
                    # bias tile (1, tn), only used in the epilogue
                    pl.BlockSpec((1, tn), lambda i, j, k: (0, j)),
                ],
                out_specs=pl.BlockSpec((tm, tn), lambda i, j, k: (i, j)),
                scratch_shapes=scratch,
            ),
            compiler_params=pltpu.CompilerParams(
                dimension_semantics=("parallel", "parallel", "arbitrary"),
                vmem_limit_bytes=_vmem_limit_bytes(footprint),
            ),
            cost_estimate=cost,
        )(x, self.w_t, self.bias)

        if (Mp, Np) != (B, self.out_size):
            out_padded = out_padded[:B, :self.out_size]
        return out_padded


def init_slimfc_params(key, in_size, out_size, bias_init=0.0):
    """Mimic nn.Linear default init: weight ~ U(-1/sqrt(in), 1/sqrt(in));
    bias = constant(bias_init) (SlimFC overrides the bias with nn.init.constant_)."""
    bound = 1.0 / jnp.sqrt(jnp.float32(in_size))
    weight = jax.random.uniform(
        key, (out_size, in_size), jnp.float32, minval=-bound, maxval=bound)
    bias = jnp.full((out_size,), bias_init, dtype=jnp.float32)
    return weight, bias


if __name__ == "__main__":
    key = jax.random.PRNGKey(0)
    kx1, kw1, kx2, kw2, kx3, kw3 = jax.random.split(key, 6)

    # --- Case 1: tiny SlimFC (typical RLlib size), single-tile (1,1,1) grid ---
    B1, IN1, OUT1 = 2, 32, 32
    x1 = jax.random.normal(kx1, (B1, IN1), dtype=jnp.float32)
    w1, b1 = init_slimfc_params(kw1, IN1, OUT1, bias_init=0.1)
    lin1 = x1 @ w1.T + b1

    fc_relu = SlimFC(w1, b1, activation="relu", batch_hint=B1)
    fc_tanh = SlimFC(w1, b1, activation="tanh", batch_hint=B1)
    fc_none = SlimFC(w1, b1, activation=None, batch_hint=B1)
    out_relu = jax.block_until_ready(fc_relu(x1))
    out_tanh = jax.block_until_ready(fc_tanh(x1))
    out_none = jax.block_until_ready(fc_none(x1))
    assert out_relu.shape == (B1, OUT1)
    assert jnp.allclose(out_relu, jnp.maximum(lin1, 0.0), atol=1e-4, rtol=1e-4)
    assert jnp.allclose(out_tanh, jnp.tanh(lin1), atol=1e-4, rtol=1e-4)
    assert jnp.allclose(out_none, lin1, atol=1e-4, rtol=1e-4)

    # --- Case 2: f32, multi-tile grid (small tiles forced to exercise M/N/K) ---
    B2, IN2, OUT2 = 16, 256, 384
    x2 = jax.random.normal(kx2, (B2, IN2), dtype=jnp.float32)
    w2, b2 = init_slimfc_params(kw2, IN2, OUT2, bias_init=0.0)
    fc2 = SlimFC(w2, b2, activation="relu", batch_hint=B2, tn=128, tk=128)
    out2 = jax.block_until_ready(fc2(x2))
    ref2 = jnp.maximum(x2 @ w2.T + b2, 0.0)
    assert out2.shape == (B2, OUT2)
    assert jnp.allclose(out2, ref2, atol=1e-4, rtol=1e-4)

    # --- Case 3: bf16 params/activations, f32 accumulation (acc-scratch path) ---
    B3, IN3, OUT3 = 32, 256, 256
    x3 = jax.random.normal(kx3, (B3, IN3), dtype=jnp.float32)
    w3, b3 = init_slimfc_params(kw3, IN3, OUT3, bias_init=0.05)
    fc3 = SlimFC(w3, b3, activation="tanh", param_dtype=jnp.bfloat16,
                 batch_hint=B3, tn=128, tk=128)
    out3 = jax.block_until_ready(fc3(x3))
    ref3 = jnp.tanh(x3 @ w3.T + b3)
    assert out3.shape == (B3, OUT3) and out3.dtype == jnp.bfloat16
    assert jnp.allclose(out3.astype(jnp.float32), ref3, atol=7e-2, rtol=7e-2)

    print("KERNEL_OK")
</pallas_src>

<mosaic_0001>
module attributes {stable_mosaic.version = 11 : i64} {
  func.func @_slimfc_kernel_f32(%arg0: i32, %arg1: i32, %arg2: i32, %arg3: memref<8x128xf32, #tpu.memory_space<vmem>>, %arg4: memref<128x128xf32, #tpu.memory_space<vmem>>, %arg5: memref<1x128xf32, #tpu.memory_space<vmem>>, %arg6: memref<8x128xf32, #tpu.memory_space<vmem>>) attributes {dimension_semantics = [#tpu.dimension_semantics<parallel>, #tpu.dimension_semantics<parallel>, #tpu.dimension_semantics<arbitrary>], iteration_bounds = array<i64: 1, 1, 1>, scalar_prefetch = 0 : i64, scratch_operands = 0 : i64, tpu.core_type = #tpu.core_type<tc>, window_params = [{transform_indices = @transform_0, window_bounds = array<i64: 8, 128>}, {transform_indices = @transform_1, window_bounds = array<i64: 128, 128>}, {transform_indices = @transform_2, window_bounds = array<i64: 1, 128>}, {transform_indices = @transform_3, window_bounds = array<i64: 8, 128>}]} {
    %c0_i32 = arith.constant 0 : i32
    %0 = arith.cmpi eq, %arg2, %c0_i32 : i32
    %1 = arith.extui %0 : i1 to i32
    %c0_i32_0 = arith.constant 0 : i32
    %2 = arith.cmpi ne, %1, %c0_i32_0 : i32
    scf.if %2 {
      %cst_10 = arith.constant 0.000000e+00 : f32
      %12 = vector.broadcast %cst_10 : f32 to vector<8x128xf32>
      %c0_11 = arith.constant 0 : index
      %c0_12 = arith.constant 0 : index
      %13 = vector.load %arg6[%c0_11, %c0_12] : memref<8x128xf32, #tpu.memory_space<vmem>>, vector<8x128xf32>
      tpu.vector_store %arg6[%c0_11, %c0_12], %12 {strides = array<i32>} : memref<8x128xf32, #tpu.memory_space<vmem>>, vector<8x128xf32>,
    } else {
    }
    %c0 = arith.constant 0 : index
    %c0_1 = arith.constant 0 : index
    %3 = vector.load %arg6[%c0, %c0_1] : memref<8x128xf32, #tpu.memory_space<vmem>>, vector<8x128xf32>
    %c0_2 = arith.constant 0 : index
    %c0_3 = arith.constant 0 : index
    %4 = vector.load %arg3[%c0_2, %c0_3] : memref<8x128xf32, #tpu.memory_space<vmem>>, vector<8x128xf32>
    %c0_4 = arith.constant 0 : index
    %c0_5 = arith.constant 0 : index
    %5 = vector.load %arg4[%c0_4, %c0_5] : memref<128x128xf32, #tpu.memory_space<vmem>>, vector<128x128xf32>
    %cst = arith.constant dense<0.000000e+00> : vector<8x128xf32>
    %6 = tpu.matmul %4, %5, %cst {dimension_numbers = #tpu.dot_dimension_numbers<[1], [0], [0], [1], [0, 0, 1, 1], [], []>} : vector<8x128xf32>, vector<128x128xf32>, vector<8x128xf32> -> vector<8x128xf32>
    %7 = arith.addf %3, %6 : vector<8x128xf32>
    %c0_6 = arith.constant 0 : index
    %c0_7 = arith.constant 0 : index
    %8 = vector.load %arg6[%c0_6, %c0_7] : memref<8x128xf32, #tpu.memory_space<vmem>>, vector<8x128xf32>
    tpu.vector_store %arg6[%c0_6, %c0_7], %7 {strides = array<i32>} : memref<8x128xf32, #tpu.memory_space<vmem>>, vector<8x128xf32>,
    %c0_i32_8 = arith.constant 0 : i32
    %9 = arith.cmpi eq, %arg2, %c0_i32_8 : i32
    %10 = arith.extui %9 : i1 to i32
    %c0_i32_9 = arith.constant 0 : i32
    %11 = arith.cmpi ne, %10, %c0_i32_9 : i32
    scf.if %11 {
      %c0_10 = arith.constant 0 : index
      %c0_11 = arith.constant 0 : index
      %12 = vector.load %arg6[%c0_10, %c0_11] : memref<8x128xf32, #tpu.memory_space<vmem>>, vector<8x128xf32>
      %c0_12 = arith.constant 0 : index
      %c0_13 = arith.constant 0 : index
      %13 = vector.load %arg5[%c0_12, %c0_13] : memref<1x128xf32, #tpu.memory_space<vmem>>, vector<1x128xf32>
      %14 = vector.broadcast %13 : vector<1x128xf32> to vector<8x128xf32>
      %15 = arith.addf %12, %14 : vector<8x128xf32>
      %cst_14 = arith.constant 0.000000e+00 : f32
      %16 = vector.broadcast %cst_14 : f32 to vector<8x128xf32>
      %17 = arith.maximumf %15, %16 : vector<8x128xf32>
      %c0_15 = arith.constant 0 : index
      %c0_16 = arith.constant 0 : index
      %18 = vector.load %arg6[%c0_15, %c0_16] : memref<8x128xf32, #tpu.memory_space<vmem>>, vector<8x128xf32>
      tpu.vector_store %arg6[%c0_15, %c0_16], %17 {strides = array<i32>} : memref<8x128xf32, #tpu.memory_space<vmem>>, vector<8x128xf32>,
    } else {
    }
    return
  }
  func.func @transform_0(%arg0: i32, %arg1: i32, %arg2: i32) -> (i32, i32) {
    %c0_i32 = arith.constant 0 : i32
    return %arg0, %arg2 : i32, i32
  }
  func.func @transform_1(%arg0: i32, %arg1: i32, %arg2: i32) -> (i32, i32) {
    %c0_i32 = arith.constant 0 : i32
    return %arg2, %arg1 : i32, i32
  }
  func.func @transform_2(%arg0: i32, %arg1: i32, %arg2: i32) -> (i32, i32) {
    %c0_i32 = arith.constant 0 : i32
    %c0_i32_0 = arith.constant 0 : i32
    return %c0_i32, %arg1 : i32, i32
  }
  func.func @transform_3(%arg0: i32, %arg1: i32, %arg2: i32) -> (i32, i32) {
    %c0_i32 = arith.constant 0 : i32
    return %arg0, %arg1 : i32, i32
  }
}

</mosaic_0001>

<bundles_post_ra>
// kernel: tpu_custom_call.1
= control target key start
LH: loop header
LB: loop body
LE: loop exit
PB: predicated region body
PF: predicated region fallthrough
CT: control target
= control target key end

     0   :  { %8 = vsyncpa [#allocation3], 0  ;;  %s241_s0 = inlined_call_operand.hbm [shape: f32[8,128], index: 0, kind: input, shape index: {}]   ;;  %s242_s1 = inlined_call_operand.hbm [shape: f32[128,128], index: 1, kind: input, shape index: {}]   ;;  %s243_s2 = inlined_call_operand.vmem [shape: f32[1,128], index: 2, kind: input, shape index: {}]   ;;  %s244_s3 = inlined_call_operand.hbm [shape: f32[8,128], index: 3, kind: output, shape index: {}]  }
   0x1   :  { %9 = vsyncpa [#allocation6], 0 }
   0x2   :  { %10 = vsyncpa [#allocation4], 0  ;;  %s16_s14 = sshll.u32 %s241_s0, 4  ;;  %s204_s15 = smov [#allocation2]   ;;  %s17_s14 = int_to_ptr.hbm [resolvable:$true] %s16_s14 }
   0x3   :  { %s18_s16 = sshll.u32 %s204_s15, 4  ;;  %s26_s19 = sshll.u32 %s242_s1, 4  ;;  %s19_s16 = int_to_ptr.vmem [resolvable:$true] %s18_s16  ;;  %s27_s19 = int_to_ptr.hbm [resolvable:$true] %s26_s19 }
   0x4   :  { %21 = dma.hbm_to_vmem [thread:$0]  %s17_s14, 128, %s19_s16, [#allocation3]  }
   0x5   :  { %s205_s20 = smov [#allocation5]   ;;  %s206_s22 = smov 128  }
   0x6   :  { %s28_s21 = sshll.u32 %s205_s20, 4  ;;  %s207_s23 = smov 8   ;;  %s29_s21 = int_to_ptr.vmem [resolvable:$true] %s28_s21 }
   0x7   :  { %34 = dma.hbm_to_vmem [thread:$0]  %s27_s19, 2048, %s29_s21, [#allocation6], %s206_s22, %s206_s22, %s207_s23  }
   0x8   :  { %198 = dma.done.wait [#allocation3], 128  }
   0x9   :  { %199 = vsyncadd [#allocation3], 4294967168 }
   0xa   :  { %200 = dma.done.wait [#allocation6], 2048  }
   0xb   :  { %201 = vsyncadd [#allocation6], 4294965248  ;;  %v67_v0 = vld [vmem:[#allocation5 + $0x78] sm:$0xff]  ;;  %v66_v1 = vld [vmem:[#allocation5 + $0x70] sm:$0xff]  ;;  %s208_s24 = smov [#allocation7]   ;;  %s108_s28 = sshll.u32 %s244_s3, 4  ;;  %s109_s28 = int_to_ptr.hbm [resolvable:$true] %s108_s28 }
   0xc   :  { %68 = vmatpush.msra.mxu0 %v67_v0  ;;  %v65_v2 = vld [vmem:[#allocation5 + $0x68] sm:$0xff]  ;;  %v64_v3 = vld [vmem:[#allocation5 + $0x60] sm:$0xff]  ;;  %v63_v4 = vld [vmem:[#allocation5 + $0x58] sm:$0xff]  ;;  %s106_s25 = sshll.u32 %s208_s24, 4  ;;  %s107_s25 = int_to_ptr.vmem [resolvable:$true] %s106_s25 }
   0xd   :  { %v62_v5 = vld [vmem:[#allocation5 + $0x50] sm:$0xff]  ;;  %v61_v6 = vld [vmem:[#allocation5 + $0x48] sm:$0xff]  ;;  %v60_v7 = vld [vmem:[#allocation5 + $0x40] sm:$0xff] }
   0xe   :  { %69 = vmatpush.msra.mxu0 %v66_v1  ;;  %v59_v8 = vld [vmem:[#allocation5 + $0x38] sm:$0xff]  ;;  %v58_v9 = vld [vmem:[#allocation5 + $0x30] sm:$0xff]  ;;  %v57_v10 = vld [vmem:[#allocation5 + $0x28] sm:$0xff] }
   0xf   :  { %v56_v11 = vld [vmem:[#allocation5 + $0x20] sm:$0xff]  ;;  %v55_v12 = vld [vmem:[#allocation5 + $0x18] sm:$0xff]  ;;  %v54_v13 = vld [vmem:[#allocation5 + $0x10] sm:$0xff] }
  0x10   :  { %70 = vmatpush.msra.mxu0 %v65_v2  ;;  %v53_v14 = vld [vmem:[#allocation5 + $0x8] sm:$0xff]  ;;  %v52_v15 = vld [vmem:[#allocation5] sm:$0xff]  ;;  %v51_v16 = vld [vmem:[#allocation2] sm:$0xff] }
  0x11   :  { %v125_v17 = vld [vmem:[%s243_s2] ss:$0 sm:$0xff] }
  0x12   :  { %71 = vmatpush.msra.mxu0 %v64_v3 }
  0x14   :  { %72 = vmatpush.msra.mxu0 %v63_v4 }
  0x16   :  { %73 = vmatpush.msra.mxu0 %v62_v5 }
  0x18   :  { %74 = vmatpush.msra.mxu0 %v61_v6 }
  0x1a   :  { %75 = vmatpush.msra.mxu0 %v60_v7 }
  0x1c   :  { %76 = vmatpush.msra.mxu0 %v59_v8 }
  0x1e   :  { %77 = vmatpush.msra.mxu0 %v58_v9 }
  0x20   :  { %78 = vmatpush.msra.mxu0 %v57_v10 }
  0x22   :  { %79 = vmatpush.msra.mxu0 %v56_v11 }
  0x24   :  { %80 = vmatpush.msra.mxu0 %v55_v12 }
  0x26   :  { %81 = vmatpush.msra.mxu0 %v54_v13 }
  0x28   :  { %82 = vmatpush.msra.mxu0 %v53_v14 }
  0x2a   :  { %83 = vmatpush.msra.mxu0 %v52_v15 }
  0x2b   :  { %84 = vmatmul.f32.vlgmr.msra.gmra.mxu0 %v51_v16 }
  0xa8   :  { %v85_v18 = vpop.f32.mrf.mxu0 }
  0xa9   :  { %v98_v19 = vadd.f32 %v125_v17, %v85_v18 }
  0xab   :  { %v99_v20 = vmax.f32 %v98_v19, 0.0 }
  0xad   :  { %100 = vst [vmem:[#allocation7] sm:$0xff] %v99_v20 }
  0xae   :  { %111 = dma.vmem_to_hbm [thread:$0]  %s107_s25, 128, %s109_s28, [#allocation4]  }
  0xaf   :  { %202 = dma.done.wait [#allocation4], 128  }
  0xb0   :  { %203 = vsyncadd [#allocation4], 4294967168 }
  0xb1   :  { %116 = vsyncpa [#allocation3], 1 }
  0xb2   :  { %117 = vsyncpa [#allocation6], 1 }
  0xb3   :  { %118 = vsyncpa [#allocation4], 1 }

</bundles_post_ra>
